<compile_context>
chip_gen: v5e
topology: v5e:2x2
jax: 0.10.0
libtpu: 0.0.40
codegen_flags: <defaults>
</compile_context>

<pallas_src>
import functools

import jax
import jax.numpy as jnp
from jax import lax
from jax.experimental import pallas as pl
from jax.experimental.pallas import tpu as pltpu


def conv_bn_relu6_kernel(x_ref, w_ref, bias_ref, o_ref, *, TH, W, K, Cin, Cout):
    """One (batch, H-tile) grid step.

    x_ref:    (TH+K-1, W+K-1, Cin)  bf16 NHWC tile including the spatial halo
    w_ref:    (K*K*Cin, Cout)       bf16 HWIO weight with BN scale folded in
    bias_ref: (1, Cout)             f32 folded BN bias
    o_ref:    (Cout, TH*W)          f32 NCHW-flattened output tile (lane dense)
    """
    x = x_ref[...]
    # kw shifts: K W-shifted neighbours, concatenated on the lane (channel) axis.
    xcat = jnp.concatenate([x[:, kw:kw + W, :] for kw in range(K)], axis=-1)
    # kh shifts are major-dim slices (cheap); concatenate on lanes -> full im2col
    # with last-axis order (kh, kw, cin), matching the weight flattening.
    patch = jnp.concatenate([xcat[kh:kh + TH] for kh in range(K)], axis=-1)
    patch = patch.reshape(TH * W, K * K * Cin)
    # Single MXU contraction over all K*K*Cin taps, f32 accumulation.
    acc = jnp.dot(patch, w_ref[...], preferred_element_type=jnp.float32)
    # Folded BN bias + ReLU6 in f32.
    y = jnp.clip(acc + bias_ref[...], 0.0, 6.0)
    # Lane-dense store: (TH*W, Cout) -> (Cout, TH*W) == NCHW-flattened tile.
    o_ref[...] = jnp.transpose(y).astype(o_ref.dtype)


def _pick_h_tile(H, W, Cin, K, itemsize, vmem_budget_bytes=4 << 20):
    """Largest H-tile dividing H whose halo'd input block fits the budget.

    Prefers tiles with a 128-aligned output lane dim (TH*W % 128 == 0) so the
    per-tile store is unmasked, then the largest such tile (amortizes per-step
    overhead and minimizes halo duplication).
    """
    halo = K - 1

    def in_bytes(t):
        return (t + halo) * (W + halo) * Cin * itemsize

    divisors = [t for t in range(1, H + 1) if H % t == 0]
    fitting = [t for t in divisors if in_bytes(t) <= vmem_budget_bytes]
    pool = fitting if fitting else [min(divisors)]
    aligned = [t for t in pool if (t * W) % 128 == 0]
    return max(aligned) if aligned else max(pool)


def conv_bn_relu6(x_nchw, w_oihw, gamma, beta, running_mean, running_var,
                  eps=1e-5, compute_dtype=jnp.bfloat16):
    """ConvBnReLU.forward (eval-mode BN), stride=1, groups=1; NCHW in, NCHW out."""
    N, Cin, H, W = x_nchw.shape
    Cout, Cin_w, K, K2 = w_oihw.shape
    assert Cin_w == Cin and K == K2, "groups != 1 not supported"
    assert K % 2 == 1, "padding=(K-1)//2 assumes an odd kernel size"
    pad = (K - 1) // 2
    itemsize = jnp.dtype(compute_dtype).itemsize

    # --- BN folding (inference semantics): fold scale into the weight, keep f32 bias.
    scale = (gamma / jnp.sqrt(running_var + eps)).astype(jnp.float32)          # (Cout,)
    bias = (beta.astype(jnp.float32)
            - running_mean.astype(jnp.float32) * scale).reshape(1, Cout)
    w = jnp.transpose(w_oihw, (2, 3, 1, 0)).astype(jnp.float32) * scale        # HWIO*scale
    w = w.reshape(K * K * Cin, Cout).astype(compute_dtype)                     # (K*K*Cin, Cout)

    # --- Layout glue: NCHW -> NHWC, zero pad, bf16 cast, halo-duplicated H tiles.
    TH = _pick_h_tile(H, W, Cin, K, itemsize)
    nH = H // TH
    THp, Wp = TH + 2 * pad, W + 2 * pad
    x = jnp.transpose(x_nchw, (0, 2, 3, 1)).astype(compute_dtype)              # (N,H,W,Cin)
    x = jnp.pad(x, ((0, 0), (pad, pad), (pad, pad), (0, 0)))                   # (N,Hp,Wp,Cin)
    rows = (jnp.arange(nH) * TH)[:, None] + jnp.arange(THp)[None, :]           # (nH, THp)
    x_tiles = x[:, rows]                                                       # (N,nH,THp,Wp,Cin)

    kernel = functools.partial(conv_bn_relu6_kernel,
                               TH=TH, W=W, K=K, Cin=Cin, Cout=Cout)

    in_block = THp * Wp * Cin * itemsize
    out_block = Cout * TH * W * 4
    fixed = K * K * Cin * Cout * itemsize + Cout * 4
    # Double-buffered blocks + resident weight/bias + headroom for in-kernel
    # intermediates; capped at 48 MiB so it is safe on v7x's 64 MiB VMEM.
    vmem_limit = int(min(48 << 20,
                         max(16 << 20, 2 * (in_block + out_block) + fixed + (8 << 20))))

    out_flat = pl.pallas_call(
        kernel,
        out_shape=jax.ShapeDtypeStruct((N, Cout, H * W), jnp.float32),
        grid_spec=pltpu.PrefetchScalarGridSpec(
            num_scalar_prefetch=0,
            grid=(N, nH),
            in_specs=[
                pl.BlockSpec((None, None, THp, Wp, Cin), lambda n, t: (n, t, 0, 0, 0)),
                pl.BlockSpec((K * K * Cin, Cout), lambda n, t: (0, 0)),
                pl.BlockSpec((1, Cout), lambda n, t: (0, 0)),
            ],
            out_specs=pl.BlockSpec((None, Cout, TH * W), lambda n, t: (n, 0, t)),
        ),
        compiler_params=pltpu.CompilerParams(
            dimension_semantics=("parallel", "parallel"),
            vmem_limit_bytes=vmem_limit,
        ),
        cost_estimate=pl.CostEstimate(
            flops=2 * N * H * W * K * K * Cin * Cout,
            transcendentals=0,
            bytes_accessed=int(x_tiles.size * itemsize + w.size * itemsize
                               + N * Cout * H * W * 4),
        ),
    )(x_tiles, w, bias)

    # Free reshape: kernel already produced NCHW-flattened output.
    return out_flat.reshape(N, Cout, H, W)


if __name__ == "__main__":
    # ConvBnReLU(4, 8, kernel_size=3, stride=1) on a small deterministic problem.
    N, Cin, H, W = 2, 4, 16, 16
    Cout, K = 8, 3

    key = jax.random.PRNGKey(0)
    kx, kw, kg, kb, km, kv = jax.random.split(key, 6)
    x = jax.random.normal(kx, (N, Cin, H, W), jnp.float32)
    w = jax.random.normal(kw, (Cout, Cin, K, K), jnp.float32) * 0.2
    gamma = jax.random.uniform(kg, (Cout,), jnp.float32, minval=0.5, maxval=1.5)
    beta = jax.random.normal(kb, (Cout,), jnp.float32) * 0.1
    running_mean = jax.random.normal(km, (Cout,), jnp.float32) * 0.1
    running_var = jax.random.uniform(kv, (Cout,), jnp.float32, minval=0.5, maxval=1.5)

    out = conv_bn_relu6(x, w, gamma, beta, running_mean, running_var)
    out = jax.block_until_ready(out)
    assert out.shape == (N, Cout, H, W) and out.dtype == jnp.float32

    eps = 1e-5
    scale = gamma / jnp.sqrt(running_var + eps)
    bias = beta - running_mean * scale

    # Reference computed with the same bf16-rounded operands as the kernel
    # (f32 accumulation), so any structural/index bug shows up far above 1e-3.
    x_b = x.astype(jnp.bfloat16).astype(jnp.float32)
    w_b = (w * scale[:, None, None, None]).astype(jnp.bfloat16).astype(jnp.float32)
    ref = lax.conv_general_dilated(
        x_b, w_b, window_strides=(1, 1), padding=((1, 1), (1, 1)),
        dimension_numbers=("NCHW", "OIHW", "NCHW"),
        preferred_element_type=jnp.float32)
    ref = jnp.clip(ref + bias[None, :, None, None], 0.0, 6.0)
    if not jnp.allclose(out, ref, atol=1e-3, rtol=1e-3):
        raise AssertionError("Pallas output mismatch vs bf16-operand reference")

    # Loose sanity check vs pure-f32 module semantics (bf16 operand rounding ~1e-2).
    ref32 = lax.conv_general_dilated(
        x, w, window_strides=(1, 1), padding=((1, 1), (1, 1)),
        dimension_numbers=("NCHW", "OIHW", "NCHW"),
        precision=lax.Precision.HIGHEST)
    ref32 = jnp.clip(ref32 * scale[None, :, None, None] + bias[None, :, None, None],
                     0.0, 6.0)
    if not jnp.allclose(out, ref32, atol=0.15, rtol=0.15):
        raise AssertionError("Pallas output mismatch vs f32 reference (sanity)")

    print("KERNEL_OK")
</pallas_src>

<mosaic_0001>
module attributes {stable_mosaic.version = 11 : i64} {
  func.func @conv_bn_relu6_kernel(%arg0: i32, %arg1: i32, %arg2: memref<1x1x18x18x4xbf16, #tpu.memory_space<vmem>>, %arg3: memref<36x8xbf16, #tpu.memory_space<vmem>>, %arg4: memref<1x8xf32, #tpu.memory_space<vmem>>, %arg5: memref<1x8x256xf32, #tpu.memory_space<vmem>>) attributes {dimension_semantics = [#tpu.dimension_semantics<parallel>, #tpu.dimension_semantics<parallel>], iteration_bounds = array<i64: 2, 1>, scalar_prefetch = 0 : i64, scratch_operands = 0 : i64, tpu.core_type = #tpu.core_type<tc>, window_params = [{transform_indices = @transform_0, window_bounds = array<i64: 1, 1, 18, 18, 4>}, {pipeline_mode = #tpu.pipeline_mode<synchronous>, transform_indices = @transform_1, window_bounds = array<i64: 36, 8>}, {pipeline_mode = #tpu.pipeline_mode<synchronous>, transform_indices = @transform_2, window_bounds = array<i64: 1, 8>}, {transform_indices = @transform_3, window_bounds = array<i64: 1, 8, 256>}]} {
    %c0 = arith.constant 0 : index
    %c0_0 = arith.constant 0 : index
    %c0_1 = arith.constant 0 : index
    %c0_2 = arith.constant 0 : index
    %c0_3 = arith.constant 0 : index
    %0 = vector.load %arg2[%c0, %c0_0, %c0_1, %c0_2, %c0_3] : memref<1x1x18x18x4xbf16, #tpu.memory_space<vmem>>, vector<1x1x18x18x4xbf16>
    %1 = vector.shape_cast %0 : vector<1x1x18x18x4xbf16> to vector<18x18x4xbf16>
    %2 = vector.extract_strided_slice %1 {offsets = [0, 0, 0], sizes = [18, 16, 4], strides = [1, 1, 1]} : vector<18x18x4xbf16> to vector<18x16x4xbf16>
    %3 = vector.extract_strided_slice %1 {offsets = [0, 1, 0], sizes = [18, 16, 4], strides = [1, 1, 1]} : vector<18x18x4xbf16> to vector<18x16x4xbf16>
    %4 = vector.extract_strided_slice %1 {offsets = [0, 2, 0], sizes = [18, 16, 4], strides = [1, 1, 1]} : vector<18x18x4xbf16> to vector<18x16x4xbf16>
    %5 = tpu.concatenate %2, %3, %4 in 2 : vector<18x16x4xbf16>, vector<18x16x4xbf16>, vector<18x16x4xbf16> -> vector<18x16x12xbf16>
    %6 = vector.extract_strided_slice %5 {offsets = [0, 0, 0], sizes = [16, 16, 12], strides = [1, 1, 1]} : vector<18x16x12xbf16> to vector<16x16x12xbf16>
    %7 = vector.extract_strided_slice %5 {offsets = [1, 0, 0], sizes = [16, 16, 12], strides = [1, 1, 1]} : vector<18x16x12xbf16> to vector<16x16x12xbf16>
    %8 = vector.extract_strided_slice %5 {offsets = [2, 0, 0], sizes = [16, 16, 12], strides = [1, 1, 1]} : vector<18x16x12xbf16> to vector<16x16x12xbf16>
    %9 = tpu.concatenate %6, %7, %8 in 2 : vector<16x16x12xbf16>, vector<16x16x12xbf16>, vector<16x16x12xbf16> -> vector<16x16x36xbf16>
    %10 = vector.shape_cast %9 : vector<16x16x36xbf16> to vector<256x36xbf16>
    %c0_4 = arith.constant 0 : index
    %c0_5 = arith.constant 0 : index
    %11 = vector.load %arg3[%c0_4, %c0_5] : memref<36x8xbf16, #tpu.memory_space<vmem>>, vector<36x8xbf16>
    %cst = arith.constant dense<0.000000e+00> : vector<256x8xf32>
    %12 = tpu.matmul %10, %11, %cst {dimension_numbers = #tpu.dot_dimension_numbers<[1], [0], [0], [1], [0, 0, 1, 1], [], []>} : vector<256x36xbf16>, vector<36x8xbf16>, vector<256x8xf32> -> vector<256x8xf32>
    %c0_6 = arith.constant 0 : index
    %c0_7 = arith.constant 0 : index
    %13 = vector.load %arg4[%c0_6, %c0_7] : memref<1x8xf32, #tpu.memory_space<vmem>>, vector<1x8xf32>
    %14 = vector.broadcast %13 : vector<1x8xf32> to vector<256x8xf32>
    %15 = arith.addf %12, %14 : vector<256x8xf32>
    %cst_8 = arith.constant 0.000000e+00 : f32
    %cst_9 = arith.constant 6.000000e+00 : f32
    %16 = vector.broadcast %cst_8 : f32 to vector<256x8xf32>
    %17 = arith.maximumf %16, %15 : vector<256x8xf32>
    %18 = vector.broadcast %cst_9 : f32 to vector<256x8xf32>
    %19 = arith.minimumf %18, %17 : vector<256x8xf32>
    %20 = tpu.transpose %19, [1, 0] : vector<256x8xf32> -> vector<8x256xf32>
    %c0_10 = arith.constant 0 : index
    %c0_11 = arith.constant 0 : index
    %c0_12 = arith.constant 0 : index
    %21 = vector.load %arg5[%c0_10, %c0_11, %c0_12] : memref<1x8x256xf32, #tpu.memory_space<vmem>>, vector<1x8x256xf32>
    %22 = vector.shape_cast %21 : vector<1x8x256xf32> to vector<8x256xf32>
    %23 = vector.shape_cast %20 : vector<8x256xf32> to vector<1x8x256xf32>
    tpu.vector_store %arg5[%c0_10, %c0_11, %c0_12], %23 {strides = array<i32>} : memref<1x8x256xf32, #tpu.memory_space<vmem>>, vector<1x8x256xf32>,
    return
  }
  func.func @transform_0(%arg0: i32, %arg1: i32) -> (i32, i32, i32, i32, i32) {
    %c0_i32 = arith.constant 0 : i32
    %c0_i32_0 = arith.constant 0 : i32
    %c0_i32_1 = arith.constant 0 : i32
    %c0_i32_2 = arith.constant 0 : i32
    return %arg0, %arg1, %c0_i32, %c0_i32_0, %c0_i32_1 : i32, i32, i32, i32, i32
  }
  func.func @transform_1(%arg0: i32, %arg1: i32) -> (i32, i32) {
    %c0_i32 = arith.constant 0 : i32
    %c0_i32_0 = arith.constant 0 : i32
    %c0_i32_1 = arith.constant 0 : i32
    return %c0_i32, %c0_i32_0 : i32, i32
  }
  func.func @transform_2(%arg0: i32, %arg1: i32) -> (i32, i32) {
    %c0_i32 = arith.constant 0 : i32
    %c0_i32_0 = arith.constant 0 : i32
    %c0_i32_1 = arith.constant 0 : i32
    return %c0_i32, %c0_i32_0 : i32, i32
  }
  func.func @transform_3(%arg0: i32, %arg1: i32) -> (i32, i32, i32) {
    %c0_i32 = arith.constant 0 : i32
    %c0_i32_0 = arith.constant 0 : i32
    return %arg0, %c0_i32, %arg1 : i32, i32, i32
  }
}

</mosaic_0001>

<bundles_post_ra>
// kernel: tpu_custom_call.1
= control target key start
LH: loop header
LB: loop body
LE: loop exit
PB: predicated region body
PF: predicated region fallthrough
CT: control target
= control target key end

     0   :  { %8 = vsyncpa [#allocation3], 0  ;;  %s2201_s0 = inlined_call_operand.vmem [shape: bf16[2,1,18,18,4], index: 0, kind: input, shape index: {}]   ;;  %s2202_s1 = inlined_call_operand.vmem [shape: bf16[36,8], index: 1, kind: input, shape index: {}]   ;;  %s2203_s2 = inlined_call_operand.vmem [shape: f32[1,8], index: 2, kind: input, shape index: {}]   ;;  %s2204_s3 = inlined_call_operand.hbm [shape: f32[2,8,256], index: 3, kind: output, shape index: {}]  }
   0x1   :  { %10 = vsyncpa [#allocation3 + $0x1], 0  ;;  %s1643_s12 = smov 0   ;;  %s1645_s13 = smov 0  }
   0x2   :  { %s1647_s14 = smov 0   ;;  %s1649_s15 = smov 0  }
   0x3   :  { %s1651_s16 = smov 0   ;;  %s1653_s17 = smov 0  }
   0x4 LB: > { %s1340_s18 = sadd.s32 4294967295, %s1617_s17   ;;  %s1341_s19 = sadd.s32 4294967294, %s1617_s17   ;;  %s1617_s17 = sphi %s1653_s17, %s16_s17   ;;  %s1613_s16 = sphi %s1651_s16, %s2211_s16   ;;  %s1609_s15 = sphi %s1649_s15, %s2210_s15   ;;  %s1605_s14 = sphi %s1647_s14, %s2209_s14   ;;  %s1601_s13 = sphi %s1645_s13, %s2208_s13   ;;  %s1597_s12 = sphi %s1643_s12, %s2207_s12  }
   0x5   : > { %s28_s20 = sadd.s32 1, %s1613_s16  ;;  %s107_s21 = sadd.s32 1, %s1605_s14 }
   0x6   : > { %p30_p0 = scmp.ge.s32.totalorder %s28_s20, 2  ;;  %p117_p1 = scmp.ne.s32.totalorder %s1605_s14, %s1601_s13 }
   0x7   : > { %p118_p2 = scmp.eq.s32.totalorder %s1340_s18, 1  ;;  %p123_p3 = scmp.ne.s32.totalorder %s1601_s13, %s1597_s12 }
   0x8   : > { %s2213_s20 = smov (%p30_p0, %s28_s20), 0  ;;  %p124_p5 = scmp.eq.s32.totalorder %s1341_s19, 1 }
   0x9   : > { %p1683_p4 = por %p118_p2, %p117_p1  ;;  %s102_s23 = ssub.s32 %s1613_s16, %s2213_s20 }
   0xa   : > { %p1344_p6 = scmp.ge.s32.totalorder %s1617_s17, 1  ;;  %p105_p7 = scmp.eq.s32.totalorder %s102_s23, 0 }
   0xb   : > { %p1690_p8 = por %p124_p5, %p123_p3  ;;  %p160_p9 = scmp.lt.s32.totalorder %s1617_s17, 3 }
   0xc   : > { %s1696_s25 = scalar_select %p105_p7, %s1605_s14, %s107_s21  }
   0xd   : > { %p161_p10 = pnand %p1344_p6, %p160_p9 }
   0xe   : > { %p188_p11 = scmp.lt.s32.totalorder (!%p161_p10), %s1609_s15, 1  ;;  %s1619_s4 = smov (!%p161_p10), 8  }
   0xf   : > { %164 = sbr.rel (%p161_p10) target bundleno = 605 (0x25d), region = 32  ;;  %s1620_s5 = smov (!%p161_p10), 4  }
  0x10   : > { %s1621_s6 = smov (!%p161_p10), 12   ;;  %s1622_s7 = smov (!%p161_p10), 24  }
  0x11   : > { %s1468_s28 = sshll.u32 (!%p161_p10), %s1609_s15, 4  ;;  %s1559_s18 = scalar_lea.hbm (!%p161_p10), %s2204_s3, 32 }
  0x14   : > { %s189_s26 = scalar_select %p188_p11, %s1609_s15, 1  ;;  %vm650_vm0 = vcmask 1046528   ;;  %vm397_vm1 = vsmask.f32 7424  ;;  %vm741_vm2 = vcmask 31744   ;;  %vm778_vm3 = vcmask 64512  }
  0x15   : > { %vm1019_vm4 = vcmask 1041408   ;;  %vm896_vm5 = vcmask 97280   ;;  %vm929_vm6 = vcmask 195584   ;;  %vm986_vm7 = vcmask 293888  }
  0x16   : > { %s1478_s27 = smul.u32 216, %s189_s26  ;;  %s185_s26 = sand.u32 1, %s1601_s13  }
  0x17   : > { %s1243_s8 = scalar_lea.sflag [#allocation3], %s185_s26 }
  0x18   : > { %s1703_s30 = scalar_lea.vmem %s2201_s0, %s1478_s27  ;;  %s1345_s27 = sshll.u32 %s185_s26, 4 }
  0x19   : > { %v1706_v0 = vld [vmem:[%s1703_s30 + $0x6c] sm:$0xff]  ;;  %v228_v1 = vld [vmem:[%s1703_s30 + $0x74] sm:$0x1]  ;;  %v231_v5 = vld [vmem:[%s1703_s30 + $0x80] sm:$0x1] }
  0x1a   : > { %v1710_v2 = vld [vmem:[%s1703_s30 + $0xc] sm:$0xff]  ;;  %v370_v3 = vunpack.c.l.b16 %v228_v1  ;;  %v204_v4 = vld [vmem:[%s1703_s30 + $0x14] sm:$0x1]  ;;  %v371_v7 = vunpack.c.l.b16 %v231_v5  ;;  %v678_v9 = vrot.slane %v1706_v0, 1  ;;  %v509_v10 = vshll.u32 %v1706_v0, 16  ;;  %v1718_v13 = vld [vmem:[%s1703_s30 + $0x78] sm:$0xff] }
  0x1b   : > { %v362_v6 = vunpack.c.l.b16 %v204_v4  ;;  %v654_v12 = vrot.slane %v1710_v2, 1  ;;  %v507_v17 = vshrl.u32 %v1706_v0, 16  ;;  %v207_v20 = vld [vmem:[%s1703_s30 + $0x20] sm:$0x1]  ;;  %v681_v23 = vrot.slane %v1718_v13, 1  ;;  %v1732_v34 = vld [vmem:[%s1703_s30 + $0x18] sm:$0xff] }
  0x1c   : > { %v388_v8 = vpack.c.b16 %v370_v3, %v370_v3  ;;  %v389_v15 = vpack.c.b16 %v371_v7, %v371_v7  ;;  %v511_v18 = vrot.slane %v509_v10, 1  ;;  %v363_v25 = vunpack.c.l.b16 %v207_v20  ;;  %v210_v28 = vld [vmem:[%s1703_s30 + $0x2c] sm:$0x1]  ;;  %v1735_v36 = vld [vmem:[%s1703_s30 + $0x24] sm:$0xff]  ;;  %v243_v52 = vld [vmem:[%s1703_s30 + $0xb0] sm:$0x1] }
  0x1d   : > { %v380_v11 = vpack.c.b16 %v362_v6, %v362_v6  ;;  %v411_v26 = vshrl.u32 %v1710_v2, 16  ;;  %v413_v27 = vshll.u32 %v1710_v2, 16  ;;  %v521_v31 = vshll.u32 %v1718_v13, 16  ;;  %v234_v41 = vld [vmem:[%s1703_s30 + $0x8c] sm:$0x1]  ;;  %v1754_v59 = vld [vmem:[%s1703_s30 + $0x84] sm:$0xff] }
  0x1e   : > { %v679_v14 = vrot.slane %v388_v8, 1  ;;  %v514_v19 = vshll.u32 %v388_v8, 16  ;;  %v682_v24 = vrot.slane %v389_v15, 1  ;;  %v512_v29 = vor.u32 %v511_v18, %v507_v17  ;;  %v1758_v3 = vld [vmem:[%s1703_s30 + $0xa8] sm:$0xff]  ;;  %v216_v20 = vld [vmem:[%s1703_s30 + $0x44] sm:$0x1] }
  0x1f   : > { %v655_v16 = vrot.slane %v380_v11, 1  ;;  %v418_v32 = vshll.u32 %v380_v11, 16  ;;  %v415_v33 = vrot.slane %v413_v27, 1  ;;  %v364_v37 = vunpack.c.l.b16 %v210_v28  ;;  %v1765_v11 = vld [vmem:[%s1703_s30 + $0x9c] sm:$0xff] }
  0x20   : > { %v680_v21 = vsel %vm650_vm0, %v678_v9, %v679_v14  ;;  %v516_v30 = vrot.slane %v514_v19, 1  ;;  %v683_v38 = vsel %vm650_vm0, %v681_v23, %v682_v24  ;;  %v381_v39 = vpack.c.b16 %v363_v25, %v363_v25 }
  0x21   : > { %723 = vrot.lane.b32.xlu1 %v680_v21, %s1619_s4  ;;  %v656_v22 = vsel %vm650_vm0, %v654_v12, %v655_v16  ;;  %v420_v35 = vrot.slane %v418_v32, 1  ;;  %v416_v40 = vor.u32 %v415_v33, %v411_v26  ;;  %v519_v43 = vshrl.u32 %v1718_v13, 16  ;;  %v240_v12 = vld [vmem:[%s1703_s30 + $0xa4] sm:$0x1]  ;;  %v1782_v32 = vld [vmem:[%s1703_s30 + $0x3c] sm:$0xff] }
  0x22   : > { %707 = vrot.lane.b32.xlu0 %v656_v22, %s1619_s4  ;;  %v517_v42 = vsel %vm397_vm1, %v512_v29, %v516_v30  ;;  %v523_v44 = vrot.slane %v521_v31, 1  ;;  %v526_v45 = vshll.u32 %v389_v15, 16  ;;  %v657_v47 = vrot.slane %v1732_v34, 1 }
  0x23   : > { %v421_v46 = vsel %vm397_vm1, %v416_v40, %v420_v35  ;;  %v1745_v48 = vpack.c.b16 %v364_v37, %v364_v37  ;;  %v437_v49 = vshll.u32 %v1735_v36, 16  ;;  %v372_v50 = vunpack.c.l.b16 %v234_v41 }
  0x24   : > { %616 = vrot.lane.b32.xlu2 %v421_v46, %s1620_s5  ;;  %v658_v51 = vrot.slane %v381_v39, 1  ;;  %v423_v53 = vshrl.u32 %v1732_v34, 16  ;;  %v425_v54 = vshll.u32 %v1732_v34, 16  ;;  %v430_v55 = vshll.u32 %v381_v39, 16 }
  0x25   : > { %v524_v56 = vor.u32 %v523_v44, %v519_v43  ;;  %v528_v57 = vrot.slane %v526_v45, 1  ;;  %v435_v58 = vshrl.u32 %v1735_v36, 16  ;;  %v439_v62 = vrot.slane %v437_v49, 1 }
  0x26   : > { %v427_v60 = vrot.slane %v425_v54, 1  ;;  %v432_v61 = vrot.slane %v430_v55, 1  ;;  %v442_v63 = vshll.u32 %v1745_v48, 16  ;;  %v390_v1 = vpack.c.b16 %v372_v50, %v372_v50 }
  0x27   : > { %v375_v4 = vunpack.c.l.b16 %v243_v52  ;;  %v659_v5 = vsel %vm650_vm0, %v657_v47, %v658_v51  ;;  %v531_v7 = vshrl.u32 %v1754_v59, 16  ;;  %v533_v8 = vshll.u32 %v1754_v59, 16 }
  0x28   : > { %v428_v6 = vor.u32 %v427_v60, %v423_v53  ;;  %v529_v9 = vsel %vm397_vm1, %v524_v56, %v528_v57  ;;  %v538_v10 = vshll.u32 %v390_v1, 16  ;;  %v440_v16 = vor.u32 %v439_v62, %v435_v58  ;;  %v219_v53 = vld [vmem:[%s1703_s30 + $0x50] sm:$0x1]  ;;  %v1802_v57 = vld [vmem:[%s1703_s30 + $0x48] sm:$0xff] }
  0x29   : > { %725 = vrot.lane.b32.xlu1 %v683_v38, %s1619_s4  ;;  %v535_v15 = vrot.slane %v533_v8, 1  ;;  %v444_v17 = vrot.slane %v442_v63, 1  ;;  %v1770_v18 = vpack.c.b16 %v375_v4, %v375_v4  ;;  %v569_v19 = vshll.u32 %v1758_v3, 16  ;;  %v1814_v8 = vld [vmem:[%s1703_s30 + $0x30] sm:$0xff] }
  0x2a   : > { %632 = vrot.lane.b32.xlu0 %v517_v42, %s1620_s5  ;;  %v433_v14 = vsel %vm397_vm1, %v428_v6, %v432_v61  ;;  %v540_v22 = vrot.slane %v538_v10, 1  ;;  %v374_v23 = vunpack.c.l.b16 %v240_v12  ;;  %v684_v24 = vrot.slane %v1754_v59, 1  ;;  %v213_v61 = vld [vmem:[%s1703_s30 + $0x38] sm:$0x1] }
  0x2b   : > { %v536_v21 = vor.u32 %v535_v15, %v531_v7  ;;  %v685_v25 = vrot.slane %v390_v1, 1  ;;  %v557_v26 = vshll.u32 %v1765_v11, 16  ;;  %v567_v27 = vshrl.u32 %v1758_v3, 16  ;;  %v237_v10 = vld [vmem:[%s1703_s30 + $0x98] sm:$0x1] }
  0x2c   : > { %618 = vrot.lane.b32.xlu2 %v433_v14, %s1620_s5  ;;  %v392_v28 = vpack.c.b16 %v374_v23, %v374_v23  ;;  %v445_v29 = vsel %vm397_vm1, %v440_v16, %v444_v17  ;;  %v571_v30 = vrot.slane %v569_v19, 1  ;;  %v574_v31 = vshll.u32 %v1770_v18, 16  ;;  %v1821_v19 = vld [vmem:[%s1703_s30 + $0x90] sm:$0xff] }
  0x2d   : > { %v366_v33 = vunpack.c.l.b16 %v216_v20  ;;  %v541_v35 = vsel %vm397_vm1, %v536_v21, %v540_v22  ;;  %v555_v37 = vshrl.u32 %v1765_v11, 16  ;;  %v559_v38 = vrot.slane %v557_v26, 1 }
  0x2e   : > { %v562_v39 = vshll.u32 %v392_v28, 16  ;;  %v686_v40 = vsel %vm650_vm0, %v684_v24, %v685_v25  ;;  %v461_v42 = vshll.u32 %v1782_v32, 16  ;;  %v572_v43 = vor.u32 %v571_v30, %v567_v27 }
  0x2f   : > { %v1788_v41 = vpack.c.b16 %v366_v33, %v366_v33  ;;  %v576_v44 = vrot.slane %v574_v31, 1  ;;  %v560_v45 = vor.u32 %v559_v38, %v555_v37  ;;  %v660_v47 = vrot.slane %v1735_v36, 1  ;;  %v225_v37 = vld [vmem:[%s1703_s30 + $0x68] sm:$0x1] }
  0x30   : > { %v564_v46 = vrot.slane %v562_v39, 1  ;;  %v661_v49 = vrot.slane %v1745_v48, 1  ;;  %v459_v50 = vshrl.u32 %v1782_v32, 16  ;;  %v463_v51 = vrot.slane %v461_v42, 1 }
  0x31   : > { %709 = vrot.lane.b32.xlu1 %v659_v5, %s1619_s4  ;;  %v466_v52 = vshll.u32 %v1788_v41, 16  ;;  %v577_v54 = vsel %vm397_vm1, %v572_v43, %v576_v44  ;;  %v367_v58 = vunpack.c.l.b16 %v219_v53  ;;  %v690_v62 = vrot.slane %v1765_v11, 1  ;;  %v1838_v44 = vld [vmem:[%s1703_s30 + $0x60] sm:$0xff] }
  0x32   : > { %634 = vrot.lane.b32.xlu0 %v529_v9, %s1620_s5  ;;  %v565_v55 = vsel %vm397_vm1, %v560_v45, %v564_v46  ;;  %v662_v56 = vsel %vm650_vm0, %v660_v47, %v661_v49  ;;  %v464_v48 = vor.u32 %v463_v51, %v459_v50  ;;  %v691_v63 = vrot.slane %v392_v28, 1 }
  0x33   : > { %v468_v60 = vrot.slane %v466_v52, 1  ;;  %v473_v1 = vshll.u32 %v1802_v57, 16  ;;  %v693_v4 = vrot.slane %v1758_v3, 1  ;;  %v694_v5 = vrot.slane %v1770_v18, 1 }
  0x34   : > { %636 = vrot.lane.b32.xlu2 %v541_v35, %s1620_s5  ;;  %v385_v6 = vpack.c.b16 %v367_v58, %v367_v58  ;;  %v365_v9 = vunpack.c.l.b16 %v213_v61  ;;  %v692_v12 = vsel %vm650_vm0, %v690_v62, %v691_v63  ;;  %v471_v14 = vshrl.u32 %v1802_v57, 16  ;;  %v1852_v63 = vld [vmem:[%s1703_s30] sm:$0xff] }
  0x35   : > { %v469_v7 = vsel %vm397_vm1, %v464_v48, %v468_v60  ;;  %v475_v15 = vrot.slane %v473_v1, 1  ;;  %v695_v17 = vsel %vm650_vm0, %v693_v4, %v694_v5  ;;  %v373_v20 = vunpack.c.l.b16 %v237_v10  ;;  %v1855_v4 = vld [vmem:[%s1703_s30 + $0xb4] sm:$0xff] }
  0x36   : > { %v478_v16 = vshll.u32 %v385_v6, 16  ;;  %v669_v18 = vrot.slane %v1802_v57, 1  ;;  %v670_v21 = vrot.slane %v385_v6, 1  ;;  %v383_v22 = vpack.c.b16 %v365_v9, %v365_v9 }
  0x37   : > { %v449_v23 = vshll.u32 %v1814_v8, 16  ;;  %v476_v24 = vor.u32 %v475_v15, %v471_v14  ;;  %v545_v26 = vshll.u32 %v1821_v19, 16  ;;  %v666_v27 = vrot.slane %v1782_v32, 1 }
  0x38   : > { %v480_v25 = vrot.slane %v478_v16, 1  ;;  %v667_v28 = vrot.slane %v1788_v41, 1  ;;  %v671_v30 = vsel %vm650_vm0, %v669_v18, %v670_v21  ;;  %v447_v31 = vshrl.u32 %v1814_v8, 16  ;;  %v249_v18 = vld [vmem:[%s1703_s30 + $0xc8] sm:$0x1] }
  0x39   : > { %620 = vrot.lane.b32.xlu1 %v445_v29, %s1620_s5  ;;  %v391_v29 = vpack.c.b16 %v373_v20, %v373_v20  ;;  %v451_v33 = vrot.slane %v449_v23, 1  ;;  %v454_v35 = vshll.u32 %v383_v22, 16  ;;  %v543_v39 = vshrl.u32 %v1821_v19, 16 }
  0x3a   : > { %727 = vrot.lane.b32.xlu0 %v686_v40, %s1619_s4  ;;  %v481_v38 = vsel %vm397_vm1, %v476_v24, %v480_v25  ;;  %v547_v40 = vrot.slane %v545_v26, 1  ;;  %v668_v43 = vsel %vm650_vm0, %v666_v27, %v667_v28  ;;  %v369_v41 = vunpack.c.l.b16 %v225_v37 }
  0x3b   : > { %v550_v42 = vshll.u32 %v391_v29, 16  ;;  %v452_v45 = vor.u32 %v451_v33, %v447_v31  ;;  %v456_v46 = vrot.slane %v454_v35, 1  ;;  %v497_v50 = vshll.u32 %v1838_v44, 16  ;;  %v1872_v31 = vld [vmem:[%s1703_s30 + $0xc0] sm:$0xff]  ;;  %v1875_v35 = vld [vmem:[%s1703_s30 + $0x54] sm:$0xff] }
  0x3c   : > { %640 = vrot.lane.b32.xlu2 %v565_v55, %s1620_s5  ;;  %v548_v47 = vor.u32 %v547_v40, %v543_v39  ;;  %v687_v51 = vrot.slane %v1821_v19, 1  ;;  %v688_v52 = vrot.slane %v391_v29, 1  ;;  %v387_v53 = vpack.c.b16 %v369_v41, %v369_v41 }
  0x3d   : > { %v552_v49 = vrot.slane %v550_v42, 1  ;;  %v457_v55 = vsel %vm397_vm1, %v452_v45, %v456_v46  ;;  %v495_v48 = vshrl.u32 %v1838_v44, 16  ;;  %v499_v60 = vrot.slane %v497_v50, 1 }
  0x3e   : > { %v502_v61 = vshll.u32 %v387_v53, 16  ;;  %v689_v62 = vsel %vm650_vm0, %v687_v51, %v688_v52  ;;  %v675_v6 = vrot.slane %v1838_v44, 1  ;;  %v663_v9 = vrot.slane %v1814_v8, 1 }
  0x3f   : > { %v553_v58 = vsel %vm397_vm1, %v548_v47, %v552_v49  ;;  %v664_v10 = vrot.slane %v383_v22, 1  ;;  %v581_v15 = vshll.u32 %v1855_v4, 16  ;;  %v222_v22 = vld [vmem:[%s1703_s30 + $0x5c] sm:$0x1]  ;;  %v579_v25 = vshrl.u32 %v1855_v4, 16 }
  0x40   : > { %v504_v14 = vrot.slane %v502_v61, 1  ;;  %v399_v28 = vshrl.u32 %v1852_v63, 16  ;;  %v377_v33 = vunpack.c.l.b16 %v249_v18  ;;  %v368_v37 = vunpack.c.l.b16 %v222_v22 }
  0x41   : > { %642 = vrot.lane.b32.xlu1 %v577_v54, %s1620_s5  ;;  %v201_v54 = vld [vmem:[%s1703_s30 + $0x8] sm:$0x1]  ;;  %v665_v23 = vsel %vm650_vm0, %v663_v9, %v664_v10  ;;  %v583_v26 = vrot.slane %v581_v15, 1  ;;  %v593_v47 = vshll.u32 %v1872_v31, 16  ;;  %v483_v52 = vshrl.u32 %v1875_v35, 16 }
  0x42   : > { %711 = vrot.lane.b32.xlu0 %v662_v56, %s1619_s4  ;;  %v246_v56 = vld [vmem:[%s1703_s30 + $0xbc] sm:$0x1]  ;;  %v361_v1 = vunpack.c.l.b16 %v201_v54  ;;  %v395_v46 = vpack.c.b16 %v377_v33, %v377_v33  ;;  %v386_v49 = vpack.c.b16 %v368_v37, %v368_v37  ;;  %v672_v15 = vrot.slane %v1875_v35, 1 }
  0x43   : > { %v376_v5 = vunpack.c.l.b16 %v246_v56  ;;  %v584_v40 = vor.u32 %v583_v26, %v579_v25  ;;  %v591_v56 = vshrl.u32 %v1872_v31, 16 }
  0x44   : > { %731 = vrot.lane.b32.xlu2 %v692_v12, %s1619_s4  ;;  %v500_v12 = vor.u32 %v499_v60, %v495_v48  ;;  %v379_v16 = vpack.c.b16 %v361_v1, %v361_v1  ;;  %v490_v54 = vshll.u32 %v386_v49, 16  ;;  %v598_v48 = vshll.u32 %v395_v46, 16 }
  0x45   : > { %v394_v20 = vpack.c.b16 %v376_v5, %v376_v5  ;;  %v651_v60 = vrot.slane %v1852_v63, 1 }
  0x46   : > { %v505_v24 = vsel %vm397_vm1, %v500_v12, %v504_v14  ;;  %v652_v61 = vrot.slane %v379_v16, 1  ;;  %v492_v1 = vrot.slane %v490_v54, 1  ;;  %v252_v12 = vld [vmem:[%s1703_s30 + $0xd4] sm:$0x1] }
  0x47   : > { %v586_v27 = vshll.u32 %v394_v20, 16  ;;  %v697_v39 = vrot.slane %v394_v20, 1  ;;  %v378_v14 = vunpack.c.l.b16 %v252_v12 }
  0x49   : > { %624 = vrot.lane.b32.xlu1 %v469_v7, %s1620_s5  ;;  %v676_v7 = vrot.slane %v387_v53, 1  ;;  %v588_v42 = vrot.slane %v586_v27, 1  ;;  %v396_v20 = vpack.c.b16 %v378_v14, %v378_v14 }
  0x4a   : > { %733 = vrot.lane.b32.xlu0 %v695_v17, %s1619_s4  ;;  %v401_v17 = vshll.u32 %v1852_v63, 16 }
  0x4b   : > { %v677_v21 = vsel %vm650_vm0, %v675_v6, %v676_v7  ;;  %v589_v51 = vsel %vm397_vm1, %v584_v40, %v588_v42  ;;  %v600_v6 = vrot.slane %v598_v48, 1  ;;  %v653_v7 = vsel %vm650_vm0, %v651_v60, %v652_v61 }
  0x4c   : > { %626 = vrot.lane.b32.xlu2 %v481_v38, %s1620_s5  ;;  %v403_v29 = vrot.slane %v401_v17, 1  ;;  %v696_v38 = vrot.slane %v1855_v4, 1  ;;  %v673_v17 = vrot.slane %v386_v49, 1  ;;  %v610_v27 = vshll.u32 %v396_v20, 16 }
  0x4e   : > { %v404_v41 = vor.u32 %v403_v29, %v399_v28  ;;  %v698_v50 = vsel %vm650_vm0, %v696_v38, %v697_v39  ;;  %v699_v28 = vrot.slane %v1872_v31, 1  ;;  %v700_v29 = vrot.slane %v395_v46, 1 }
  0x4f   : > { %v612_v33 = vrot.slane %v610_v27, 1 }
  0x50   : > { %v701_v37 = vsel %vm650_vm0, %v699_v28, %v700_v29 }
  0x51   : > { %717 = vrot.lane.b32.xlu1 %v671_v30, %s1619_s4  ;;  %v406_v30 = vshll.u32 %v379_v16, 16  ;;  %v1901_v16 = vld [vmem:[%s1703_s30 + $0xcc] sm:$0xff] }
  0x52   : > { %715 = vrot.lane.b32.xlu0 %v668_v43, %s1619_s4  ;;  %v485_v43 = vshll.u32 %v1875_v35, 16  ;;  %v702_v18 = vrot.slane %v1901_v16, 1  ;;  %v603_v25 = vshrl.u32 %v1901_v16, 16 }
  0x53   : > { %v408_v45 = vrot.slane %v406_v30, 1 }
  0x54   : > { %638 = vrot.lane.b32.xlu2 %v553_v58, %s1620_s5  ;;  %v487_v53 = vrot.slane %v485_v43, 1  ;;  %v595_v58 = vrot.slane %v593_v47, 1 }
  0x56   : > { %v596_v5 = vor.u32 %v595_v58, %v591_v56 }
  0x58   : > { %v601_v10 = vsel %vm397_vm1, %v596_v5, %v600_v6 }
  0x59   : > { %622 = vrot.lane.b32.xlu1 %v457_v55, %s1620_s5  ;;  %v409_v55 = vsel %vm397_vm1, %v404_v41, %v408_v45 }
  0x5a   : > { %729 = vrot.lane.b32.xlu0 %v689_v62, %s1619_s4  ;;  %v488_v62 = vor.u32 %v487_v53, %v483_v52 }
  0x5c   : > { %630 = vrot.lane.b32.xlu2 %v505_v24, %s1620_s5  ;;  %v493_v9 = vsel %vm397_vm1, %v488_v62, %v492_v1  ;;  %v605_v24 = vshll.u32 %v1901_v16, 16 }
  0x5e   : > { %v607_v26 = vrot.slane %v605_v24, 1 }
  0x60   : > { %v608_v30 = vor.u32 %v607_v26, %v603_v25 }
  0x61   : > { %721 = vrot.lane.b32.xlu1 %v677_v21, %s1619_s4  ;;  %v703_v21 = vrot.slane %v396_v20, 1 }
  0x62   : > { %713 = vrot.lane.b32.xlu0 %v665_v23, %s1619_s4  ;;  %v674_v23 = vsel %vm650_vm0, %v672_v15, %v673_v17  ;;  %v613_v38 = vsel %vm397_vm1, %v608_v30, %v612_v33  ;;  %v966_v33 = vld [vmem:[%s2202_s1 + $0x10] sm:$0x3] }
  0x63   : > { %v704_v22 = vsel %vm650_vm0, %v702_v18, %v703_v21 }
  0x64   : > { %644 = vrot.lane.b32.xlu2 %v589_v51, %s1620_s5 }
  0x69   : > { %735 = vrot.lane.b32.xlu1 %v698_v50, %s1619_s4 }
  0x6a   : > { %614 = vrot.lane.b32.xlu0 %v409_v55, %s1620_s5 }
  0x6c   : > { %628 = vrot.lane.b32.xlu2 %v493_v9, %s1620_s5 }
  0x71   : > { %705 = vrot.lane.b32.xlu1 %v653_v7, %s1619_s4 }
  0x72   : > { %646 = vrot.lane.b32.xlu0 %v601_v10, %s1620_s5 }
  0x74   : > { %737 = vrot.lane.b32.xlu2 %v701_v37, %s1619_s4  ;;  %v980_v37 = vunpack.c.l.b16 %v966_v33 }
  0x79   : > { %719 = vrot.lane.b32.xlu1 %v674_v23, %s1619_s4 }
  0x7a   : > { %739 = vrot.lane.b32.xlu0 %v704_v22, %s1619_s4  ;;  %s1256_s4 = scalar_lea.hbm %s2204_s3, %s1468_s28 }
  0x7e   : > { %v617_v39 = vpop.permute.xlu2 %616 }
  0x7f   : > { %v745_v51 = vsel %vm741_vm2, %v1710_v2, %v617_v39 }
  0x81   : > { %648 = vrot.lane.b32.xlu1 %v613_v38, %s1620_s5  ;;  %v983_v38 = vpack.c.b16 %v980_v37, %v980_v37  ;;  %s187_s5 = scalar_lea.vmem [#allocation2], %s1345_s27 }
  0x86   : > { %v619_v40 = vpop.permute.xlu2 %618 }
  0x8e   : > { %v637_v47 = vpop.permute.xlu2 %636 }
  0x8f   : > { %v765_v2 = vsel %vm741_vm2, %v1754_v59, %v637_v47 }
  0x93   : > { %v724_v42 = vpop.permute.xlu1 %723 }
  0x94   : > { %v708_v43 = vpop.permute.xlu0 %707 }
  0x95   : > { %v1934_v55 = vsel %vm778_vm3, %v745_v51, %v708_v43  ;;  %v1467_v43 = vld [vmem:[%s2202_s1 + $0x8] sm:$0xff] }
  0x9b   : > { %v726_v41 = vpop.permute.xlu1 %725 }
  0x9c   : > { %v633_v45 = vpop.permute.xlu0 %632 }
  0x9d   : > { %v761_v46 = vsel %vm741_vm2, %v1706_v0, %v633_v45  ;;  %v641_v0 = vpop.permute.xlu2 %640 }
  0x9e   : > { %v1918_v49 = vsel %vm778_vm3, %v761_v46, %v724_v42 }
  0x9f   : > { %847 = vrot.lane.b32.xlu0 %v1918_v49, %s1621_s6 }
  0xa3   : > { %v710_v50 = vpop.permute.xlu1 %709 }
  0xa4   : > { %v635_v52 = vpop.permute.xlu0 %634 }
  0xa5   : > { %v763_v53 = vsel %vm741_vm2, %v1718_v13, %v635_v52  ;;  %v747_v13 = vsel %vm741_vm2, %v1732_v34, %v619_v40  ;;  %v732_v59 = vpop.permute.xlu2 %731  ;;  %v769_v34 = vsel %vm741_vm2, %v1765_v11, %v641_v0  ;;  %v1021_v40 = vsel %vm1019_vm4, %v983_v38, 0 }
  0xa6   : > { %v1927_v54 = vsel %vm778_vm3, %v763_v53, %v726_v41  ;;  %v1946_v60 = vsel %vm778_vm3, %v747_v13, %v710_v50  ;;  %v1962_v6 = vsel %vm778_vm3, %v769_v34, %v732_v59  ;;  %1470 = vmatpush.bf16.msra.mxu2 %v1021_v40  ;;  %1028 = vmatpush.bf16.msra.mxu0 %v1021_v40 }
  0xa7   : > { %880 = vrot.lane.b32.xlu2 %v1927_v54, %s1622_s7  ;;  %849 = vrot.lane.b32.xlu1 %v1927_v54, %s1621_s6 }
  0xa8   : > { %831 = vrot.lane.b32.xlu0 %v1934_v55, %s1621_s6  ;;  %1471 = vmatpush.bf16.msra.mxu3 %v1021_v40 }
  0xa9   : > { %1469 = vmatpush.bf16.msra.mxu1 %v1021_v40 }
  0xaa   : > { %1473 = vmatpush.bf16.msra.mxu2 %v1467_v43  ;;  %1029 = vmatpush.bf16.msra.mxu0 %v1467_v43 }
  0xab   : > { %v621_v56 = vpop.permute.xlu1 %620 }
  0xac   : > { %v728_v58 = vpop.permute.xlu0 %727  ;;  %v749_v62 = vsel %vm741_vm2, %v1735_v36, %v621_v56  ;;  %1474 = vmatpush.bf16.msra.mxu3 %v1467_v43 }
  0xad   : > { %v1943_v48 = vsel %vm778_vm3, %v765_v2, %v728_v58  ;;  %v627_v7 = vpop.permute.xlu2 %626  ;;  %1472 = vmatpush.bf16.msra.mxu1 %v1467_v43 }
  0xae   : > { %v755_v12 = vsel %vm741_vm2, %v1802_v57, %v627_v7 }
  0xaf   : > { %864 = vrot.lane.b32.xlu2 %v1946_v60, %s1622_s7  ;;  %833 = vrot.lane.b32.xlu1 %v1946_v60, %s1621_s6 }
  0xb0   : > { %882 = vrot.lane.b32.xlu0 %v1943_v48, %s1622_s7 }
  0xb3   : > { %v643_v61 = vpop.permute.xlu1 %642 }
  0xb4   : > { %v712_v1 = vpop.permute.xlu0 %711  ;;  %v771_v11 = vsel %vm741_vm2, %v1758_v3, %v643_v61 }
  0xb5   : > { %v1959_v5 = vsel %vm778_vm3, %v749_v62, %v712_v1  ;;  %v639_v14 = vpop.permute.xlu2 %638 }
  0xb6   : > { %v767_v57 = vsel %vm741_vm2, %v1821_v19, %v639_v14 }
  0xb7   : > { %866 = vrot.lane.b32.xlu2 %v1959_v5, %s1622_s7 }
  0xb8   : > { %855 = vrot.lane.b32.xlu0 %v1962_v6, %s1621_s6 }
  0xbb   : > { %v625_v9 = vpop.permute.xlu1 %624 }
  0xbc   : > { %v734_v10 = vpop.permute.xlu0 %733  ;;  %v753_v17 = vsel %vm741_vm2, %v1782_v32, %v625_v9 }
  0xbd   : > { %v1971_v36 = vsel %vm778_vm3, %v771_v11, %v734_v10  ;;  %v631_v22 = vpop.permute.xlu2 %630 }
  0xbe   : > { %888 = vrot.lane.b32.xlu1 %v1971_v36, %s1622_s7  ;;  %v759_v46 = vsel %vm741_vm2, %v1838_v44, %v631_v22 }
  0xc3   : > { %v718_v15 = vpop.permute.xlu1 %717 }
  0xc4   : > { %v716_v20 = vpop.permute.xlu0 %715  ;;  %v1980_v18 = vsel %vm778_vm3, %v755_v12, %v718_v15 }
  0xc5   : > { %v1983_v3 = vsel %vm778_vm3, %v753_v17, %v716_v20  ;;  %872 = vrot.lane.b32.xlu0 %v1980_v18, %s1622_s7  ;;  %v645_v19 = vpop.permute.xlu2 %644 }
  0xc6   : > { %839 = vrot.lane.b32.xlu2 %v1983_v3, %s1621_s6  ;;  %v773_v28 = vsel %vm741_vm2, %v1855_v4, %v645_v19 }
  0xcb   : > { %v623_v21 = vpop.permute.xlu1 %622 }
  0xcc   : > { %v730_v23 = vpop.permute.xlu0 %729  ;;  %v751_v25 = vsel %vm741_vm2, %v1814_v8, %v623_v21 }
  0xcd   : > { %v1992_v32 = vsel %vm778_vm3, %v767_v57, %v730_v23  ;;  %v629_v4 = vpop.permute.xlu2 %628 }
  0xce   : > { %851 = vrot.lane.b32.xlu2 %v1943_v48, %s1621_s6  ;;  %884 = vrot.lane.b32.xlu1 %v1992_v32, %s1622_s7  ;;  %v757_v39 = vsel %vm741_vm2, %v1875_v35, %v629_v4  ;;  %v1466_v35 = vld [vmem:[%s2202_s1] sm:$0xff] }
  0xcf   : > { %1476 = vmatpush.bf16.msra.mxu2 %v1466_v35  ;;  %1030 = vmatpush.bf16.msra.mxu0 %v1466_v35 }
  0xd0   : > { %1477 = vmatpush.bf16.msra.mxu3 %v1466_v35  ;;  %1475 = vmatpush.bf16.msra.mxu1 %v1466_v35 }
  0xd3   : > { %v722_v24 = vpop.permute.xlu1 %721 }
  0xd4   : > { %v714_v26 = vpop.permute.xlu0 %713  ;;  %v796_v50 = vsel %vm778_vm3, %v759_v46, %v722_v24 }
  0xd5   : > { %v2001_v27 = vsel %vm778_vm3, %v751_v25, %v714_v26  ;;  %v738_v53 = vpop.permute.xlu2 %737 }
  0xd6   : > { %835 = vrot.lane.b32.xlu2 %v1959_v5, %s1621_s6  ;;  %857 = vrot.lane.b32.xlu1 %v1971_v36, %s1621_s6 }
  0xd7   : > { %868 = vrot.lane.b32.xlu0 %v2001_v27, %s1622_s7 }
  0xdb   : > { %v736_v29 = vpop.permute.xlu1 %735 }
  0xdc   : > { %v2012_v8 = vsel %vm778_vm3, %v773_v28, %v736_v29  ;;  %v615_v42 = vpop.permute.xlu0 %614 }
  0xdd   : > { %v743_v59 = vsel %vm741_vm2, %v1852_v63, %v615_v42 }
  0xde   : > { %890 = vrot.lane.b32.xlu2 %v2012_v8, %s1622_s7 }
  0xdf   : > { %841 = vrot.lane.b32.xlu0 %v1980_v18, %s1621_s6 }
  0xe3   : > { %v706_v30 = vpop.permute.xlu1 %705 }
  0xe4   : > { %v647_v47 = vpop.permute.xlu0 %646  ;;  %v780_v61 = vsel %vm778_vm3, %v743_v59, %v706_v30  ;;  %v2130_v59 = vld [vmem:[%s2203_s2] ss:$0 sm:$0xff] }
  0xe5   : > { %v775_v51 = vsel %vm741_vm2, %v1872_v31, %v647_v47 }
  0xe6   : > { %853 = vrot.lane.b32.xlu2 %v1992_v32, %s1621_s6  ;;  %v812_v0 = vsel %vm778_vm3, %v775_v51, %v738_v53 }
  0xe7   : > { %886 = vrot.lane.b32.xlu0 %v1962_v6, %s1622_s7 }
  0xeb   : > { %v720_v41 = vpop.permute.xlu1 %719 }
  0xec   : > { %v2031_v45 = vsel %vm778_vm3, %v757_v39, %v720_v41  ;;  %v740_v2 = vpop.permute.xlu0 %739 }
  0xed   : > { %874 = vrot.lane.b32.xlu1 %v2031_v45, %s1622_s7 }
  0xee   : > { %870 = vrot.lane.b32.xlu2 %v1983_v3, %s1622_s7 }
  0xef   : > { %859 = vrot.lane.b32.xlu0 %v2012_v8, %s1621_s6 }
  0xf3   : > { %v649_v52 = vpop.permute.xlu1 %648 }
  0xf4   : > { %v777_v44 = vsel %vm741_vm2, %v1901_v16, %v649_v52 }
  0xf5   : > { %837 = vrot.lane.b32.xlu1 %v2001_v27, %s1621_s6  ;;  %v814_v13 = vsel %vm778_vm3, %v777_v44, %v740_v2 }
  0xf6   : > { %843 = vrot.lane.b32.xlu2 %v2031_v45, %s1621_s6 }
  0xf7   : > { %876 = vrot.lane.b32.xlu0 %v796_v50, %s1622_s7 }
  0xfd   : > { %892 = vrot.lane.b32.xlu1 %v812_v0, %s1622_s7 }
  0xfe   : > { %894 = vrot.lane.b32.xlu2 %v814_v13, %s1622_s7 }
  0xff   : > { %845 = vrot.lane.b32.xlu0 %v796_v50, %s1621_s6 }
 0x101   : > { %v881_v31 = vpop.permute.xlu2 %880 }
 0x105   : > { %861 = vrot.lane.b32.xlu1 %v812_v0, %s1621_s6  ;;  %s1258_s6 = sshll.u32 %s187_s5, 4  ;;  %s1259_s6 = int_to_ptr.vmem [resolvable:$true] %s1258_s6 }
 0x109   : > { %v865_v34 = vpop.permute.xlu2 %864 }
 0x10d   : > { %878 = vrot.lane.b32.xlu1 %v1918_v49, %s1622_s7  ;;  %s1260_s7 = sshll.u32 %s1256_s4, 4  ;;  %s1261_s7 = int_to_ptr.hbm [resolvable:$true] %s1260_s7 }
 0x10e   : > { %s1553_s9 = sshra.s32 %s1261_s7, 4  ;;  %s1554_s9 = int_to_ptr.hbm [resolvable:$true] %s1553_s9 }
 0x10f   : > { %s1555_s10 = scalar_lea.hbm %s1554_s9, 16  ;;  %p1560_p1 = scmp.lt.s32.totalorder %s1554_s9, %s2204_s3 }
 0x110   : > { %p1556_p12 = scmp.ne.s32.totalorder %s1554_s9, %s1555_s10  ;;  %p1561_p2 = scmp.lt.s32.totalorder %s1559_s18, %s1555_s10 }
 0x111   : > { %v848_v16 = vpop.permute.xlu0 %847  ;;  %v867_v12 = vpop.permute.xlu2 %866 }
 0x112   : > { %v914_v56 = vsel %vm896_vm5, %v796_v50, %v848_v16  ;;  %p1557_p13 = pnand %p1556_p12, %p1683_p4  ;;  %p1562_p3 = por %p1561_p2, %p1560_p1 }
 0x113   : > { %v947_v58 = vsel %vm929_vm6, %v914_v56, %v881_v31 }
 0x114   : > { %1435 = vmatmul.msk.bf16.vlgmr.msra.gmra.mxu2 %vm986_vm7, %v947_v58  ;;  %p1558_p0 = pneg %p1557_p13 }
 0x116   : > { %p1563_p5 = pnand %p1562_p3, %p1558_p0 }
 0x119   : > { %v850_v7 = vpop.permute.xlu1 %849 }
 0x11a   : > { %v832_v62 = vpop.permute.xlu0 %831  ;;  %v916_v11 = vsel %vm896_vm5, %v1918_v49, %v850_v7 }
 0x11b   : > { %v898_v1 = vsel %vm896_vm5, %v780_v61, %v832_v62 }
 0x11c   : > { %v931_v9 = vsel %vm929_vm6, %v898_v1, %v865_v34 }
 0x11d   : > { %1427 = vmatmul.msk.bf16.vlgmr.msra.gmra.mxu0 %vm986_vm7, %v931_v9 }
 0x120   : > { %v840_v17 = vpop.permute.xlu2 %839 }
 0x121   : > { %v834_v63 = vpop.permute.xlu1 %833  ;;  %v906_v24 = vsel %vm896_vm5, %v2001_v27, %v840_v17 }
 0x122   : > { %v883_v10 = vpop.permute.xlu0 %882  ;;  %v900_v15 = vsel %vm896_vm5, %v1934_v55, %v834_v63 }
 0x123   : > { %v949_v14 = vsel %vm929_vm6, %v916_v11, %v883_v10  ;;  %v933_v20 = vsel %vm929_vm6, %v900_v15, %v867_v12 }
 0x124   : > { %1436 = vmatmul.msk.bf16.gmra.mxu2 %vm986_vm7, %v949_v14 }
 0x128   : > { %v852_v22 = vpop.permute.xlu2 %851 }
 0x129   : > { %v918_v19 = vsel %vm896_vm5, %v1927_v54, %v852_v22 }
 0x12a   : > { %v856_v57 = vpop.permute.xlu0 %855 }
 0x12b   : > { %v922_v21 = vsel %vm896_vm5, %v1992_v32, %v856_v57 }
 0x12d   : > { %1428 = vmatmul.msk.bf16.gmra.mxu0 %vm986_vm7, %v933_v20 }
 0x130   : > { %v889_v49 = vpop.permute.xlu1 %888  ;;  %v836_v26 = vpop.permute.xlu2 %835 }
 0x131   : > { %v955_v23 = vsel %vm929_vm6, %v922_v21, %v889_v49  ;;  %v902_v30 = vsel %vm896_vm5, %v1946_v60, %v836_v26 }
 0x132   : > { %1439 = vmatmul.msk.bf16.vlgmr.msra.gmra.mxu3 %vm986_vm7, %v955_v23 }
 0x137   : > { %v873_v25 = vpop.permute.xlu0 %872 }
 0x138   : > { %v939_v55 = vsel %vm929_vm6, %v906_v24, %v873_v25  ;;  %v891_v33 = vpop.permute.xlu2 %890 }
 0x139   : > { %1431 = vmatmul.msk.bf16.vlgmr.msra.gmra.mxu1 %vm986_vm7, %v939_v55 }
 0x140   : > { %v885_v28 = vpop.permute.xlu1 %884  ;;  %v854_v39 = vpop.permute.xlu2 %853 }
 0x141   : > { %v951_v32 = vsel %vm929_vm6, %v918_v19, %v885_v28  ;;  %v920_v40 = vsel %vm896_vm5, %v1943_v48, %v854_v39 }
 0x142   : > { %1437 = vmatmul.msk.bf16.gmra.mxu2 %vm986_vm7, %v951_v32 }
 0x148   : > { %v858_v29 = vpop.permute.xlu1 %857  ;;  %v871_v35 = vpop.permute.xlu2 %870 }
 0x149   : > { %v924_v27 = vsel %vm896_vm5, %v1962_v6, %v858_v29  ;;  %v869_v37 = vpop.permute.xlu0 %868 }
 0x14a   : > { %v935_v4 = vsel %vm929_vm6, %v902_v30, %v869_v37  ;;  %v957_v38 = vsel %vm929_vm6, %v924_v27, %v891_v33 }
 0x14b   : > { %1429 = vmatmul.msk.bf16.gmra.mxu0 %vm986_vm7, %v935_v4  ;;  %1440 = vmatmul.msk.bf16.gmra.mxu3 %vm986_vm7, %v957_v38 }
 0x150   : > { %v844_v51 = vpop.permute.xlu2 %843 }
 0x151   : > { %v842_v54 = vpop.permute.xlu0 %841 }
 0x152   : > { %v908_v6 = vsel %vm896_vm5, %v1983_v3, %v842_v54  ;;  %v910_v3 = vsel %vm896_vm5, %v1980_v18, %v844_v51 }
 0x158   : > { %v895_v16 = vpop.permute.xlu2 %894 }
 0x159   : > { %v887_v42 = vpop.permute.xlu0 %886 }
 0x15a   : > { %v953_v60 = vsel %vm929_vm6, %v920_v40, %v887_v42 }
 0x15b   : > { %1438 = vmatmul.msk.bf16.gmra.mxu2 %vm986_vm7, %v953_v60 }
 0x15f   : > { %v875_v43 = vpop.permute.xlu1 %874 }
 0x160   : > { %v941_v41 = vsel %vm929_vm6, %v908_v6, %v875_v43 }
 0x161   : > { %1432 = vmatmul.msk.bf16.gmra.mxu1 %vm986_vm7, %v941_v41  ;;  %v860_v47 = vpop.permute.xlu0 %859 }
 0x162   : > { %v926_v44 = vsel %vm896_vm5, %v1971_v36, %v860_v47 }
 0x167   : > { %v838_v46 = vpop.permute.xlu1 %837 }
 0x168   : > { %v904_v50 = vsel %vm896_vm5, %v1959_v5, %v838_v46 }
 0x169   : > { %v937_v48 = vsel %vm929_vm6, %v904_v50, %v871_v35  ;;  %v877_v52 = vpop.permute.xlu0 %876 }
 0x16a   : > { %1430 = vmatmul.msk.bf16.gmra.mxu0 %vm986_vm7, %v937_v48  ;;  %v943_v0 = vsel %vm929_vm6, %v910_v3, %v877_v52 }
 0x16f   : > { %v893_v53 = vpop.permute.xlu1 %892 }
 0x170   : > { %v959_v2 = vsel %vm929_vm6, %v926_v44, %v893_v53 }
 0x171   : > { %1433 = vmatmul.msk.bf16.gmra.mxu1 %vm986_vm7, %v943_v0  ;;  %1441 = vmatmul.msk.bf16.gmra.mxu3 %vm986_vm7, %v959_v2  ;;  %v846_v13 = vpop.permute.xlu0 %845 }
 0x172   : > { %v912_v18 = vsel %vm896_vm5, %v2031_v45, %v846_v13 }
 0x177   : > { %v862_v5 = vpop.permute.xlu1 %861 }
 0x178   : > { %v928_v31 = vsel %vm896_vm5, %v2012_v8, %v862_v5 }
 0x179   : > { %v961_v58 = vsel %vm929_vm6, %v928_v31, %v895_v16 }
 0x17f   : > { %v879_v56 = vpop.permute.xlu1 %878 }
 0x180   : > { %v945_v36 = vsel %vm929_vm6, %v912_v18, %v879_v56 }
 0x181   : > { %1434 = vmatmul.msk.bf16.gmra.mxu1 %vm986_vm7, %v945_v36  ;;  %1442 = vmatmul.msk.bf16.gmra.mxu3 %vm986_vm7, %v961_v58 }
 0x197   : > { %v1072_v34 = vpop.f32.mrf.mxu2 }
 0x198   : > { %v1073_v8 = vadd.f32 %v2130_v59, %v1072_v34 }
 0x19a   : > { %v1128_v61 = vmax.f32 %v1073_v8, 0.0  ;;  %v1032_v45 = vpop.f32.mrf.mxu0 }
 0x19b   : > { %v1033_v62 = vadd.f32 %v2130_v59, %v1032_v45 }
 0x19c   : > { %v1160_v1 = vmin.f32 %v1128_v61, 6.0 }
 0x19d   : > { %v1112_v7 = vmax.f32 %v1033_v62, 0.0 }
 0x19e   : > { %1208 = vxpose.xlu0.b32.start [1/16] (narrow) %v1160_v1, 8 }
 0x19f   : > { %v1074_v9 = vpop.f32.mrf.mxu2  ;;  %v1144_v11 = vmin.f32 %v1112_v7, 6.0 }
 0x1a0   : > { %v1075_v10 = vadd.f32 %v2130_v59, %v1074_v9 }
 0x1a1   : > { %1176 = vxpose.xlu2.b32.start [1/16] (narrow) %v1144_v11, 8 }
 0x1a2   : > { %v1129_v12 = vmax.f32 %v1075_v10, 0.0  ;;  %v1034_v14 = vpop.f32.mrf.mxu0 }
 0x1a3   : > { %v1035_v63 = vadd.f32 %v2130_v59, %v1034_v14 }
 0x1a4   : > { %v1161_v15 = vmin.f32 %v1129_v12, 6.0 }
 0x1a5   : > { %v1113_v17 = vmax.f32 %v1035_v63, 0.0 }
 0x1a6   : > { %1209 = vxpose.xlu0.b32.cont [2/16] (narrow) %v1161_v15, 8 }
 0x1a7   : > { %v1145_v20 = vmin.f32 %v1113_v17, 6.0  ;;  %v1077_v57 = vpop.f32.mrf.mxu2 }
 0x1a8   : > { %v1078_v21 = vadd.f32 %v2130_v59, %v1077_v57 }
 0x1a9   : > { %1177 = vxpose.xlu2.b32.cont [2/16] (narrow) %v1145_v20, 8 }
 0x1aa   : > { %v1130_v49 = vmax.f32 %v1078_v21, 0.0  ;;  %v1037_v23 = vpop.f32.mrf.mxu0 }
 0x1ab   : > { %v1038_v22 = vadd.f32 %v2130_v59, %v1037_v23 }
 0x1ac   : > { %v1162_v24 = vmin.f32 %v1130_v49, 6.0 }
 0x1ad   : > { %v1114_v25 = vmax.f32 %v1038_v22, 0.0 }
 0x1ae   : > { %1210 = vxpose.xlu0.b32.cont [3/16] (narrow) %v1162_v24, 8 }
 0x1af   : > { %v1146_v55 = vmin.f32 %v1114_v25, 6.0  ;;  %v1079_v26 = vpop.f32.mrf.mxu2 }
 0x1b0   : > { %v1080_v19 = vadd.f32 %v2130_v59, %v1079_v26 }
 0x1b1   : > { %1178 = vxpose.xlu2.b32.cont [3/16] (narrow) %v1146_v55, 8 }
 0x1b2   : > { %v1131_v28 = vmax.f32 %v1080_v19, 0.0  ;;  %v1039_v32 = vpop.f32.mrf.mxu0 }
 0x1b3   : > { %v1040_v29 = vadd.f32 %v2130_v59, %v1039_v32 }
 0x1b4   : > { %v1163_v30 = vmin.f32 %v1131_v28, 6.0 }
 0x1b5   : > { %v1115_v33 = vmax.f32 %v1040_v29, 0.0  ;;  %v1092_v51 = vpop.f32.mrf.mxu3 }
 0x1b6   : > { %1211 = vxpose.xlu0.b32.cont [4/16] (narrow) %v1163_v30, 8  ;;  %v1052_v0 = vpop.f32.mrf.mxu1  ;;  %v1093_v36 = vadd.f32 %v2130_v59, %v1092_v51 }
 0x1b7   : > { %v1147_v27 = vmin.f32 %v1115_v33, 6.0  ;;  %v1053_v10 = vadd.f32 %v2130_v59, %v1052_v0 }
 0x1b8   : > { %v1136_v8 = vmax.f32 %v1093_v36, 0.0 }
 0x1b9   : > { %1179 = vxpose.xlu2.b32.cont [4/16] (narrow) %v1147_v27, 8  ;;  %v1120_v15 = vmax.f32 %v1053_v10, 0.0 }
 0x1ba   : > { %v1168_v9 = vmin.f32 %v1136_v8, 6.0 }
 0x1bb   : > { %v1152_v21 = vmin.f32 %v1120_v15, 6.0 }
 0x1bd   : > { %v1094_v31 = vpop.f32.mrf.mxu3 }
 0x1be   : > { %v1054_v61 = vpop.f32.mrf.mxu1  ;;  %v1095_v11 = vadd.f32 %v2130_v59, %v1094_v31 }
 0x1bf   : > { %v1055_v49 = vadd.f32 %v2130_v59, %v1054_v61 }
 0x1c0   : > { %v1137_v14 = vmax.f32 %v1095_v11, 0.0 }
 0x1c1   : > { %v1121_v22 = vmax.f32 %v1055_v49, 0.0 }
 0x1c2   : > { %v1169_v20 = vmin.f32 %v1137_v14, 6.0 }
 0x1c3   : > { %v1153_v19 = vmin.f32 %v1121_v22, 6.0 }
 0x1c5   : > { %v1082_v37 = vpop.f32.mrf.mxu2 }
 0x1c6   : > { %v1083_v4 = vadd.f32 %v2130_v59, %v1082_v37 }
 0x1c8   : > { %v1132_v38 = vmax.f32 %v1083_v4, 0.0  ;;  %v1042_v54 = vpop.f32.mrf.mxu0 }
 0x1c9   : > { %v1043_v39 = vadd.f32 %v2130_v59, %v1042_v54 }
 0x1ca   : > { %v1164_v40 = vmin.f32 %v1132_v38, 6.0 }
 0x1cb   : > { %v1116_v42 = vmax.f32 %v1043_v39, 0.0 }
 0x1cc   : > { %1212 = vxpose.xlu0.b32.cont [5/16] (narrow) %v1164_v40, 8 }
 0x1cd   : > { %v1148_v60 = vmin.f32 %v1116_v42, 6.0  ;;  %v1084_v6 = vpop.f32.mrf.mxu2 }
 0x1ce   : > { %v1085_v43 = vadd.f32 %v2130_v59, %v1084_v6  ;;  %v1097_v62 = vpop.f32.mrf.mxu3 }
 0x1cf   : > { %1180 = vxpose.xlu2.b32.cont [5/16] (narrow) %v1148_v60, 8  ;;  %v1098_v57 = vadd.f32 %v2130_v59, %v1097_v62 }
 0x1d0   : > { %v1133_v41 = vmax.f32 %v1085_v43, 0.0  ;;  %v1044_v35 = vpop.f32.mrf.mxu0 }
 0x1d1   : > { %v1045_v47 = vadd.f32 %v2130_v59, %v1044_v35  ;;  %v1138_v23 = vmax.f32 %v1098_v57, 0.0 }
 0x1d2   : > { %v1165_v46 = vmin.f32 %v1133_v41, 6.0 }
 0x1d3   : > { %v1117_v50 = vmax.f32 %v1045_v47, 0.0  ;;  %v1170_v55 = vmin.f32 %v1138_v23, 6.0 }
 0x1d4   : > { %1213 = vxpose.xlu0.b32.cont [6/16] (narrow) %v1165_v46, 8 }
 0x1d5   : > { %v1149_v48 = vmin.f32 %v1117_v50, 6.0 }
 0x1d6   : > { %v1099_v17 = vpop.f32.mrf.mxu3 }
 0x1d7   : > { %1181 = vxpose.xlu2.b32.cont [6/16] (narrow) %v1149_v48, 8  ;;  %v1100_v26 = vadd.f32 %v2130_v59, %v1099_v17 }
 0x1d9   : > { %v1139_v32 = vmax.f32 %v1100_v26, 0.0 }
 0x1db   : > { %v1171_v30 = vmin.f32 %v1139_v32, 6.0 }
 0x1de   : > { %v1087_v52 = vpop.f32.mrf.mxu2  ;;  %v1057_v63 = vpop.f32.mrf.mxu1 }
 0x1df   : > { %v1088_v3 = vadd.f32 %v2130_v59, %v1087_v52  ;;  %v1058_v28 = vadd.f32 %v2130_v59, %v1057_v63 }
 0x1e1   : > { %v1134_v44 = vmax.f32 %v1088_v3, 0.0  ;;  %v1122_v29 = vmax.f32 %v1058_v28, 0.0 }
 0x1e3   : > { %v1166_v53 = vmin.f32 %v1134_v44, 6.0  ;;  %v1154_v37 = vmin.f32 %v1122_v29, 6.0 }
 0x1e5   : > { %1214 = vxpose.xlu0.b32.cont [7/16] (narrow) %v1166_v53, 8 }
 0x1e6   : > { %v1089_v2 = vpop.f32.mrf.mxu2  ;;  %v1059_v24 = vpop.f32.mrf.mxu1 }
 0x1e7   : > { %v1090_v5 = vadd.f32 %v2130_v59, %v1089_v2  ;;  %v1047_v13 = vpop.f32.mrf.mxu0  ;;  %v1060_v4 = vadd.f32 %v2130_v59, %v1059_v24 }
 0x1e8   : > { %v1048_v18 = vadd.f32 %v2130_v59, %v1047_v13 }
 0x1e9   : > { %v1135_v16 = vmax.f32 %v1090_v5, 0.0  ;;  %v1123_v39 = vmax.f32 %v1060_v4, 0.0 }
 0x1ea   : > { %v1118_v56 = vmax.f32 %v1048_v18, 0.0 }
 0x1eb   : > { %v1167_v58 = vmin.f32 %v1135_v16, 6.0  ;;  %v1155_v60 = vmin.f32 %v1123_v39, 6.0 }
 0x1ec   : > { %v1150_v34 = vmin.f32 %v1118_v56, 6.0 }
 0x1ed   : > { %1215 = vxpose.xlu0.b32.cont [8/16] (narrow) %v1167_v58, 8 }
 0x1ee   : > { %1182 = vxpose.xlu2.b32.cont [7/16] (narrow) %v1150_v34, 8  ;;  %v1062_v33 = vpop.f32.mrf.mxu1 }
 0x1ef   : > { %v1049_v45 = vpop.f32.mrf.mxu0  ;;  %v1063_v6 = vadd.f32 %v2130_v59, %v1062_v33 }
 0x1f0   : > { %v1050_v1 = vadd.f32 %v2130_v59, %v1049_v45 }
 0x1f1   : > { %v1124_v47 = vmax.f32 %v1063_v6, 0.0 }
 0x1f2   : > { %v1119_v7 = vmax.f32 %v1050_v1, 0.0 }
 0x1f3   : > { %v1156_v48 = vmin.f32 %v1124_v47, 6.0 }
 0x1f4   : > { %v1151_v12 = vmin.f32 %v1119_v7, 6.0  ;;  %v1102_v25 = vpop.f32.mrf.mxu3 }
 0x1f5   : > { %1216 = vxpose.xlu0.b32.cont [9/16] (narrow) %v1168_v9, 8  ;;  %v1103_v27 = vadd.f32 %v2130_v59, %v1102_v25 }
 0x1f6   : > { %1183 = vxpose.xlu2.b32.cont [8/16] (narrow) %v1151_v12, 8  ;;  %v1064_v43 = vpop.f32.mrf.mxu1 }
 0x1f7   : > { %v1140_v54 = vmax.f32 %v1103_v27, 0.0  ;;  %v1065_v51 = vadd.f32 %v2130_v59, %v1064_v43 }
 0x1f9   : > { %v1172_v40 = vmin.f32 %v1140_v54, 6.0  ;;  %v1125_v44 = vmax.f32 %v1065_v51, 0.0 }
 0x1fb   : > { %v1157_v5 = vmin.f32 %v1125_v44, 6.0 }
 0x1fc   : > { %v1104_v38 = vpop.f32.mrf.mxu3 }
 0x1fd   : > { %1217 = vxpose.xlu0.b32.cont [10/16] (narrow) %v1169_v20, 8  ;;  %v1105_v42 = vadd.f32 %v2130_v59, %v1104_v38 }
 0x1fe   : > { %1184 = vxpose.xlu2.b32.cont [9/16] (narrow) %v1152_v21, 8  ;;  %v1067_v52 = vpop.f32.mrf.mxu1 }
 0x1ff   : > { %v1141_v35 = vmax.f32 %v1105_v42, 0.0  ;;  %v1068_v13 = vadd.f32 %v2130_v59, %v1067_v52 }
 0x201   : > { %v1173_v46 = vmin.f32 %v1141_v35, 6.0  ;;  %v1126_v18 = vmax.f32 %v1068_v13, 0.0 }
 0x203   : > { %v1158_v36 = vmin.f32 %v1126_v18, 6.0 }
 0x204   : > { %v1107_v41 = vpop.f32.mrf.mxu3 }
 0x205   : > { %1218 = vxpose.xlu0.b32.cont [11/16] (narrow) %v1170_v55, 8  ;;  %v1108_v50 = vadd.f32 %v2130_v59, %v1107_v41 }
 0x206   : > { %1185 = vxpose.xlu2.b32.cont [10/16] (narrow) %v1153_v19, 8  ;;  %v1069_v16 = vpop.f32.mrf.mxu1 }
 0x207   : > { %v1142_v3 = vmax.f32 %v1108_v50, 0.0  ;;  %v1070_v58 = vadd.f32 %v2130_v59, %v1069_v16 }
 0x209   : > { %v1174_v0 = vmin.f32 %v1142_v3, 6.0  ;;  %v1127_v34 = vmax.f32 %v1070_v58, 0.0 }
 0x20b   : > { %v1159_v8 = vmin.f32 %v1127_v34, 6.0 }
 0x20c   : > { %v1109_v53 = vpop.f32.mrf.mxu3 }
 0x20d   : > { %1219 = vxpose.xlu0.b32.cont [12/16] (narrow) %v1171_v30, 8  ;;  %v1110_v2 = vadd.f32 %v2130_v59, %v1109_v53 }
 0x20e   : > { %1186 = vxpose.xlu2.b32.cont [11/16] (narrow) %v1154_v37, 8 }
 0x20f   : > { %v1143_v31 = vmax.f32 %v1110_v2, 0.0 }
 0x211   : > { %v1175_v56 = vmin.f32 %v1143_v31, 6.0 }
 0x215   : > { %1220 = vxpose.xlu0.b32.cont [13/16] (narrow) %v1172_v40, 8 }
 0x216   : > { %1187 = vxpose.xlu2.b32.cont [12/16] (narrow) %v1155_v60, 8 }
 0x21d   : > { %1221 = vxpose.xlu0.b32.cont [14/16] (narrow) %v1173_v46, 8 }
 0x21e   : > { %1188 = vxpose.xlu2.b32.cont [13/16] (narrow) %v1156_v48, 8 }
 0x225   : > { %1222 = vxpose.xlu0.b32.cont [15/16] (narrow) %v1174_v0, 8 }
 0x226   : > { %1189 = vxpose.xlu2.b32.cont [14/16] (narrow) %v1157_v5, 8 }
 0x22d   : > { %1223 = vxpose.xlu0.b32.end [16/16] (narrow) %v1175_v56, 8 }
 0x22e   : > { %1190 = vxpose.xlu2.b32.cont [15/16] (narrow) %v1158_v36, 8 }
 0x236   : > { %1191 = vxpose.xlu2.b32.end [16/16] (narrow) %v1159_v8, 8 }
 0x257   : > { %v1192_v61 = vpop.trf.xlu2 }
 0x258   : > { %1240 = vst [vmem:[%s187_s5] sm:$0xff] %v1192_v61 }
 0x259   : > { %v1224_v59 = vpop.trf.xlu0 }
 0x25a   : > { %1241 = vst [vmem:[%s187_s5 + $0x8] sm:$0xff] %v1224_v59 }
 0x25b   : > { %1566 = shalt.err (!%p1563_p5)
}
 0x25c   : > { %1479 = dma.vmem_to_hbm [thread:$0]  (%p1683_p4), %s1259_s6, 256, %s1261_s7, %s1243_s8  }
 0x25d PF: > { %p1485_p6 = scmp.ge.s32.totalorder %s1617_s17, 2  ;;  %s1272_s23 = sand.u32 1, %s1597_s12  }
 0x25e   : > { %s1273_s26 = scalar_lea.sflag [#allocation3], %s1272_s23 }
 0x25f   : > { %p1482_p7 = pnand %p1485_p6, %p1690_p8 }
 0x261   : > { %p1483_p9 = pneg %p1482_p7 }
 0x263   : > { %1592 = dma.done.wait (%p1483_p9), %s1273_s26, 256  }
 0x264   : > { %1594 = vsyncadd (%p1483_p9), %s1273_s26, 4294967040  ;;  %s16_s17 = sadd.s32 1, %s1617_s17   ;;  %s2207_s12 = smov %s1601_s13 }
 0x265   : > { %p13_p10 = scmp.ge.s32.totalorder %s16_s17, 4   ;;  %s2208_s13 = smov %s1605_s14 }
 0x266   : > { %s2209_s14 = smov %s1696_s25  ;;  %s2210_s15 = smov %s1613_s16 }
 0x267   : > { %s2211_s16 = smov %s2213_s20  ;;  %15 = sbr.rel (!%p13_p10) target bundleno = 4 (0x4), region = 67 }
 0x26c   :  { %1279 = vsyncpa [#allocation3], 1 }
 0x26d   :  { %1281 = vsyncpa [#allocation3 + $0x1], 1 }

</bundles_post_ra>
